<compile_context>
chip_gen: v5e
topology: v5e:2x2
jax: 0.10.0
libtpu: 0.0.40
codegen_flags: <defaults>
</compile_context>

<pallas_src>
import jax
import jax.numpy as jnp
import numpy as np
from jax import lax
from jax.experimental import pallas as pl
from jax.experimental.pallas import tpu as pltpu

_EPS = 1e-5


def _conv_bn_relu_mean_kernel(x1_ref, w1_ref, g1_ref, bt1_ref,
                              w2_ref, g2_ref, bt2_ref, out_ref, h1s_ref):
    B, C2 = out_ref.shape
    BT = x1_ref.shape[0]
    T = BT // B
    C1 = w1_ref.shape[1]
    T2 = T - 1                       # conv2: kernel=2, no padding
    n2 = float(B * T2)

    # ---- conv1 as one im2col matmul: (B*T, 3*D) @ (3*D, C1) ----
    acc1 = jnp.dot(x1_ref[...], w1_ref[...],
                   preferred_element_type=jnp.float32)           # (BT, C1)

    # ---- BN1 (training-mode batch stats, biased var) + ReLU, fused affine ----
    # Single pass: sum + sum-of-squares.  The conv1 bias shifts the batch mean by
    # exactly b1 and leaves the variance unchanged, so it cancels and is omitted.
    inv_n1 = 1.0 / BT
    s1 = jnp.sum(acc1, axis=0, keepdims=True)
    ss1 = jnp.sum(acc1 * acc1, axis=0, keepdims=True)
    m1 = s1 * inv_n1
    v1 = ss1 * inv_n1 - m1 * m1
    scale1 = g1_ref[...] * lax.rsqrt(v1 + _EPS)                  # (1, C1)
    shift1 = bt1_ref[...] - m1 * scale1
    h1 = jnp.maximum(acc1 * scale1 + shift1, 0.0)                # (BT, C1)

    # ---- conv2 im2col: pair each row r with row r+1 ----
    # Stage h1 in a VMEM scratch with zeroed pad rows; the "+1 row" window is then
    # a plain (statically) unaligned sublane read -- no MXU permutation matmul.
    h1s_ref[pl.ds(BT, 8), :] = jnp.zeros((8, C1), jnp.float32)   # zero pad rows
    h1s_ref[pl.ds(0, BT), :] = h1
    h1_next = h1s_ref[pl.ds(1, BT), :]                           # h1_next[r] = h1[r+1]

    # Single K = 2*C1 matmul over all B*T rows; rows whose second tap crosses a
    # batch boundary (t == T-1) are masked out of BN2 stats and the output mean.
    x2 = jnp.concatenate([h1, h1_next], axis=-1)                 # (BT, 2*C1), lane concat
    acc2 = jnp.dot(x2, w2_ref[...],
                   preferred_element_type=jnp.float32)           # (BT, C2)

    a2 = acc2.reshape(B, T, C2)                                  # tile-aligned split
    valid = lax.broadcasted_iota(jnp.int32, (B, T, 1), 1) != (T - 1)

    # ---- BN2 (masked batch stats) + ReLU, fused affine ----
    a2m = jnp.where(valid, a2, 0.0)
    s2 = jnp.sum(a2m, axis=(0, 1), keepdims=True)
    ss2 = jnp.sum(a2m * a2m, axis=(0, 1), keepdims=True)
    m2 = s2 * (1.0 / n2)
    v2 = ss2 * (1.0 / n2) - m2 * m2
    scale2 = g2_ref[...] * lax.rsqrt(v2 + _EPS)                  # (1, 1, C2)
    shift2 = bt2_ref[...] - m2 * scale2
    h2 = jnp.maximum(a2 * scale2 + shift2, 0.0)
    h2 = jnp.where(valid, h2, 0.0)                               # zero invalid rows

    # ---- mean over the length axis (T2 valid positions per batch) ----
    out_ref[...] = jnp.sum(h2, axis=1) * (1.0 / T2)


def conv1d_two_layers(x, params):
    """x: (B, T, input_size) float32 -- same input the PyTorch module takes."""
    w1, b1, g1, bt1, w2, b2, g2, bt2 = params
    del b1, b2   # conv biases cancel exactly inside training-mode BatchNorm
    B, T, D = x.shape
    C1, C2 = w1.shape[2], w2.shape[2]

    # PyTorch: x = x.reshape(B, x.shape[2], x.shape[1]) -- a raw reshape
    # (reinterpretation), NOT a transpose.  Reproduce it exactly, go channels-last,
    # and build conv1's 3-tap im2col here (D is tiny, so pack lanes up front).
    xr = jnp.reshape(x, (B, D, T))                  # NCW view, as PyTorch sees it
    xc = jnp.transpose(xr, (0, 2, 1))               # (B, T, D) channels-last
    xp = jnp.pad(xc, ((0, 0), (1, 1), (0, 0)))      # conv1 padding=1
    x1 = jnp.concatenate([xp[:, k:k + T, :] for k in range(3)],
                         axis=-1).reshape(B * T, 3 * D)          # (B*T, 3*D)

    w1f = w1.reshape(3 * D, C1)                     # tap-major rows, matches x1
    w2f = w2.reshape(2 * C1, C2)                    # tap-major rows, matches x2
    row = lambda a: a.reshape(1, -1)

    f = pl.pallas_call(
        _conv_bn_relu_mean_kernel,
        out_shape=jax.ShapeDtypeStruct((B, C2), jnp.float32),
        in_specs=[pl.BlockSpec(memory_space=pltpu.MemorySpace.VMEM)
                  for _ in range(7)],
        out_specs=pl.BlockSpec(memory_space=pltpu.MemorySpace.VMEM),
        scratch_shapes=[pltpu.VMEM((B * T + 8, C1), jnp.float32)],
    )
    return f(x1, w1f, row(g1), row(bt1), w2f, row(g2), row(bt2))


def reference(x, params):
    """Independent plain-JAX reference using lax.conv (NCW, torch weight layout)."""
    w1, b1, g1, bt1, w2, b2, g2, bt2 = params
    B, T, D = x.shape
    xr = jnp.reshape(x, (B, D, T))
    dn = ('NCH', 'OIH', 'NCH')

    def bn_relu(y, g, b):
        m = jnp.mean(y, axis=(0, 2), keepdims=True)
        v = jnp.mean((y - m) ** 2, axis=(0, 2), keepdims=True)
        yn = (y - m) * lax.rsqrt(v + _EPS) * g.reshape(1, -1, 1) + b.reshape(1, -1, 1)
        return jnp.maximum(yn, 0.0)

    w1_t = jnp.transpose(w1, (2, 1, 0))   # (Cout, Cin, K) torch layout
    w2_t = jnp.transpose(w2, (2, 1, 0))
    y1 = lax.conv_general_dilated(xr, w1_t, (1,), [(1, 1)], dimension_numbers=dn)
    y1 = bn_relu(y1 + b1.reshape(1, -1, 1), g1, bt1)
    y2 = lax.conv_general_dilated(y1, w2_t, (1,), [(0, 0)], dimension_numbers=dn)
    y2 = bn_relu(y2 + b2.reshape(1, -1, 1), g2, bt2)
    return jnp.mean(y2, axis=2)


def init_params(key, input_size, c1=128, c2=128):
    ks = jax.random.split(key, 8)
    w1 = 0.1 * jax.random.normal(ks[0], (3, input_size, c1), jnp.float32)
    b1 = 0.1 * jax.random.normal(ks[1], (c1,), jnp.float32)
    g1 = 1.0 + 0.1 * jax.random.normal(ks[2], (c1,), jnp.float32)
    bt1 = 0.1 * jax.random.normal(ks[3], (c1,), jnp.float32)
    w2 = 0.1 * jax.random.normal(ks[4], (2, c1, c2), jnp.float32)
    b2 = 0.1 * jax.random.normal(ks[5], (c2,), jnp.float32)
    g2 = 1.0 + 0.1 * jax.random.normal(ks[6], (c2,), jnp.float32)
    bt2 = 0.1 * jax.random.normal(ks[7], (c2,), jnp.float32)
    return (w1, b1, g1, bt1, w2, b2, g2, bt2)


if __name__ == "__main__":
    key = jax.random.PRNGKey(0)
    kx, kp = jax.random.split(key)

    B, T, D = 2, 16, 4            # batch=2, seq=16, input_size=4
    x = jax.random.normal(kx, (B, T, D), jnp.float32)
    params = init_params(kp, D, c1=128, c2=128)

    out = jax.block_until_ready(conv1d_two_layers(x, params))
    ref = jax.block_until_ready(reference(x, params))

    np.testing.assert_allclose(np.asarray(out), np.asarray(ref),
                               rtol=1e-3, atol=1e-3)
    assert out.shape == (B, 128)
    print("KERNEL_OK")
</pallas_src>

<mosaic_0001>
module attributes {stable_mosaic.version = 11 : i64} {
  func.func @_conv_bn_relu_mean_kernel(%arg0: memref<32x12xf32, #tpu.memory_space<vmem>>, %arg1: memref<12x128xf32, #tpu.memory_space<vmem>>, %arg2: memref<1x128xf32, #tpu.memory_space<vmem>>, %arg3: memref<1x128xf32, #tpu.memory_space<vmem>>, %arg4: memref<256x128xf32, #tpu.memory_space<vmem>>, %arg5: memref<1x128xf32, #tpu.memory_space<vmem>>, %arg6: memref<1x128xf32, #tpu.memory_space<vmem>>, %arg7: memref<2x128xf32, #tpu.memory_space<vmem>>, %arg8: memref<40x128xf32, #tpu.memory_space<vmem>>) attributes {dimension_semantics = [], scalar_prefetch = 0 : i64, scratch_operands = 1 : i64, tpu.core_type = #tpu.core_type<tc>} {
    %c0 = arith.constant 0 : index
    %c0_0 = arith.constant 0 : index
    %0 = vector.load %arg0[%c0, %c0_0] : memref<32x12xf32, #tpu.memory_space<vmem>>, vector<32x12xf32>
    %c0_1 = arith.constant 0 : index
    %c0_2 = arith.constant 0 : index
    %1 = vector.load %arg1[%c0_1, %c0_2] : memref<12x128xf32, #tpu.memory_space<vmem>>, vector<12x128xf32>
    %cst = arith.constant dense<0.000000e+00> : vector<32x128xf32>
    %2 = tpu.matmul %0, %1, %cst {dimension_numbers = #tpu.dot_dimension_numbers<[1], [0], [0], [1], [0, 0, 1, 1], [], []>} : vector<32x12xf32>, vector<12x128xf32>, vector<32x128xf32> -> vector<32x128xf32>
    %cst_3 = arith.constant dense<0.000000e+00> : vector<128xf32>
    %3 = vector.multi_reduction <add>, %2, %cst_3 [0] : vector<32x128xf32> to vector<128xf32>
    %4 = vector.shape_cast %3 : vector<128xf32> to vector<1x128xf32>
    %5 = arith.mulf %2, %2 : vector<32x128xf32>
    %cst_4 = arith.constant dense<0.000000e+00> : vector<128xf32>
    %6 = vector.multi_reduction <add>, %5, %cst_4 [0] : vector<32x128xf32> to vector<128xf32>
    %7 = vector.shape_cast %6 : vector<128xf32> to vector<1x128xf32>
    %cst_5 = arith.constant 3.125000e-02 : f32
    %8 = vector.broadcast %cst_5 : f32 to vector<1x128xf32>
    %9 = arith.mulf %4, %8 : vector<1x128xf32>
    %cst_6 = arith.constant 3.125000e-02 : f32
    %10 = vector.broadcast %cst_6 : f32 to vector<1x128xf32>
    %11 = arith.mulf %7, %10 : vector<1x128xf32>
    %12 = arith.mulf %9, %9 : vector<1x128xf32>
    %13 = arith.subf %11, %12 : vector<1x128xf32>
    %c0_7 = arith.constant 0 : index
    %c0_8 = arith.constant 0 : index
    %14 = vector.load %arg2[%c0_7, %c0_8] : memref<1x128xf32, #tpu.memory_space<vmem>>, vector<1x128xf32>
    %cst_9 = arith.constant 9.99999974E-6 : f32
    %15 = vector.broadcast %cst_9 : f32 to vector<1x128xf32>
    %16 = arith.addf %13, %15 : vector<1x128xf32>
    %17 = math.rsqrt %16 : vector<1x128xf32>
    %18 = arith.mulf %14, %17 : vector<1x128xf32>
    %c0_10 = arith.constant 0 : index
    %c0_11 = arith.constant 0 : index
    %19 = vector.load %arg3[%c0_10, %c0_11] : memref<1x128xf32, #tpu.memory_space<vmem>>, vector<1x128xf32>
    %20 = arith.mulf %9, %18 : vector<1x128xf32>
    %21 = arith.subf %19, %20 : vector<1x128xf32>
    %22 = vector.broadcast %18 : vector<1x128xf32> to vector<32x128xf32>
    %23 = arith.mulf %2, %22 : vector<32x128xf32>
    %24 = vector.broadcast %21 : vector<1x128xf32> to vector<32x128xf32>
    %25 = arith.addf %23, %24 : vector<32x128xf32>
    %cst_12 = arith.constant 0.000000e+00 : f32
    %26 = vector.broadcast %cst_12 : f32 to vector<32x128xf32>
    %27 = arith.maximumf %25, %26 : vector<32x128xf32>
    %cst_13 = arith.constant 0.000000e+00 : f32
    %28 = vector.broadcast %cst_13 : f32 to vector<8x128xf32>
    %c32 = arith.constant 32 : index
    %c0_14 = arith.constant 0 : index
    %29 = vector.load %arg8[%c32, %c0_14] : memref<40x128xf32, #tpu.memory_space<vmem>>, vector<8x128xf32>
    tpu.vector_store %arg8[%c32, %c0_14], %28 {strides = array<i32>} : memref<40x128xf32, #tpu.memory_space<vmem>>, vector<8x128xf32>,
    %c0_15 = arith.constant 0 : index
    %c0_16 = arith.constant 0 : index
    %30 = vector.load %arg8[%c0_15, %c0_16] : memref<40x128xf32, #tpu.memory_space<vmem>>, vector<32x128xf32>
    tpu.vector_store %arg8[%c0_15, %c0_16], %27 {strides = array<i32>} : memref<40x128xf32, #tpu.memory_space<vmem>>, vector<32x128xf32>,
    %c1 = arith.constant 1 : index
    %c0_17 = arith.constant 0 : index
    %31 = vector.load %arg8[%c1, %c0_17] : memref<40x128xf32, #tpu.memory_space<vmem>>, vector<32x128xf32>
    %32 = tpu.concatenate %27, %31 in 1 : vector<32x128xf32>, vector<32x128xf32> -> vector<32x256xf32>
    %c0_18 = arith.constant 0 : index
    %c0_19 = arith.constant 0 : index
    %33 = vector.load %arg4[%c0_18, %c0_19] : memref<256x128xf32, #tpu.memory_space<vmem>>, vector<256x128xf32>
    %cst_20 = arith.constant dense<0.000000e+00> : vector<32x128xf32>
    %34 = tpu.matmul %32, %33, %cst_20 {dimension_numbers = #tpu.dot_dimension_numbers<[1], [0], [0], [1], [0, 0, 1, 1], [], []>} : vector<32x256xf32>, vector<256x128xf32>, vector<32x128xf32> -> vector<32x128xf32>
    %35 = vector.shape_cast %34 : vector<32x128xf32> to vector<2x16x128xf32>
    %36 = tpu.iota {dimensions = array<i32: 1>} : vector<2x16x1xi32>
    %c15_i32 = arith.constant 15 : i32
    %37 = vector.broadcast %c15_i32 : i32 to vector<2x16x1xi32>
    %38 = arith.cmpi ne, %36, %37 : vector<2x16x1xi32>
    %cst_21 = arith.constant 0.000000e+00 : f32
    %39 = vector.shape_cast %38 : vector<2x16x1xi1> to vector<2x16x1xi1>
    %40 = vector.broadcast %39 : vector<2x16x1xi1> to vector<2x16x128xi1>
    %41 = vector.broadcast %cst_21 : f32 to vector<2x16x128xf32>
    %42 = arith.select %40, %35, %41 : vector<2x16x128xi1>, vector<2x16x128xf32>
    %cst_22 = arith.constant dense<0.000000e+00> : vector<128xf32>
    %43 = vector.multi_reduction <add>, %42, %cst_22 [0, 1] : vector<2x16x128xf32> to vector<128xf32>
    %44 = vector.shape_cast %43 : vector<128xf32> to vector<1x1x128xf32>
    %45 = arith.mulf %42, %42 : vector<2x16x128xf32>
    %cst_23 = arith.constant dense<0.000000e+00> : vector<128xf32>
    %46 = vector.multi_reduction <add>, %45, %cst_23 [0, 1] : vector<2x16x128xf32> to vector<128xf32>
    %47 = vector.shape_cast %46 : vector<128xf32> to vector<1x1x128xf32>
    %cst_24 = arith.constant 0.0333333351 : f32
    %48 = vector.broadcast %cst_24 : f32 to vector<1x1x128xf32>
    %49 = arith.mulf %44, %48 : vector<1x1x128xf32>
    %cst_25 = arith.constant 0.0333333351 : f32
    %50 = vector.broadcast %cst_25 : f32 to vector<1x1x128xf32>
    %51 = arith.mulf %47, %50 : vector<1x1x128xf32>
    %52 = arith.mulf %49, %49 : vector<1x1x128xf32>
    %53 = arith.subf %51, %52 : vector<1x1x128xf32>
    %c0_26 = arith.constant 0 : index
    %c0_27 = arith.constant 0 : index
    %54 = vector.load %arg5[%c0_26, %c0_27] : memref<1x128xf32, #tpu.memory_space<vmem>>, vector<1x128xf32>
    %cst_28 = arith.constant 9.99999974E-6 : f32
    %55 = vector.broadcast %cst_28 : f32 to vector<1x1x128xf32>
    %56 = arith.addf %53, %55 : vector<1x1x128xf32>
    %57 = math.rsqrt %56 : vector<1x1x128xf32>
    %58 = vector.shape_cast %54 : vector<1x128xf32> to vector<1x1x128xf32>
    %59 = arith.mulf %58, %57 : vector<1x1x128xf32>
    %c0_29 = arith.constant 0 : index
    %c0_30 = arith.constant 0 : index
    %60 = vector.load %arg6[%c0_29, %c0_30] : memref<1x128xf32, #tpu.memory_space<vmem>>, vector<1x128xf32>
    %61 = arith.mulf %49, %59 : vector<1x1x128xf32>
    %62 = vector.shape_cast %60 : vector<1x128xf32> to vector<1x1x128xf32>
    %63 = arith.subf %62, %61 : vector<1x1x128xf32>
    %64 = vector.broadcast %59 : vector<1x1x128xf32> to vector<2x16x128xf32>
    %65 = arith.mulf %35, %64 : vector<2x16x128xf32>
    %66 = vector.broadcast %63 : vector<1x1x128xf32> to vector<2x16x128xf32>
    %67 = arith.addf %65, %66 : vector<2x16x128xf32>
    %cst_31 = arith.constant 0.000000e+00 : f32
    %68 = vector.broadcast %cst_31 : f32 to vector<2x16x128xf32>
    %69 = arith.maximumf %67, %68 : vector<2x16x128xf32>
    %cst_32 = arith.constant 0.000000e+00 : f32
    %70 = vector.shape_cast %38 : vector<2x16x1xi1> to vector<2x16x1xi1>
    %71 = vector.broadcast %70 : vector<2x16x1xi1> to vector<2x16x128xi1>
    %72 = vector.broadcast %cst_32 : f32 to vector<2x16x128xf32>
    %73 = arith.select %71, %69, %72 : vector<2x16x128xi1>, vector<2x16x128xf32>
    %cst_33 = arith.constant dense<0.000000e+00> : vector<2x128xf32>
    %74 = vector.multi_reduction <add>, %73, %cst_33 [1] : vector<2x16x128xf32> to vector<2x128xf32>
    %cst_34 = arith.constant 0.0666666701 : f32
    %75 = vector.broadcast %cst_34 : f32 to vector<2x128xf32>
    %76 = arith.mulf %74, %75 : vector<2x128xf32>
    %c0_35 = arith.constant 0 : index
    %c0_36 = arith.constant 0 : index
    %77 = vector.load %arg7[%c0_35, %c0_36] : memref<2x128xf32, #tpu.memory_space<vmem>>, vector<2x128xf32>
    tpu.vector_store %arg7[%c0_35, %c0_36], %76 {strides = array<i32>} : memref<2x128xf32, #tpu.memory_space<vmem>>, vector<2x128xf32>,
    return
  }
}

</mosaic_0001>

<bundles_post_ra>
// kernel: tpu_custom_call.1
= control target key start
LH: loop header
LB: loop body
LE: loop exit
PB: predicated region body
PF: predicated region fallthrough
CT: control target
= control target key end

     0   :  { %12 = vsyncpa [#allocation4], 0  ;;  %s584_s0 = inlined_call_operand.vmem [shape: f32[32,12], index: 0, kind: input, shape index: {}]   ;;  %s585_s1 = inlined_call_operand.vmem [shape: f32[12,128], index: 1, kind: input, shape index: {}]   ;;  %s586_s2 = inlined_call_operand.vmem [shape: f32[1,128], index: 2, kind: input, shape index: {}]   ;;  %s587_s3 = inlined_call_operand.vmem [shape: f32[1,128], index: 3, kind: input, shape index: {}]   ;;  %s588_s4 = inlined_call_operand.hbm [shape: f32[256,128], index: 4, kind: input, shape index: {}]   ;;  %s589_s5 = inlined_call_operand.vmem [shape: f32[1,128], index: 5, kind: input, shape index: {}]   ;;  %s590_s6 = inlined_call_operand.vmem [shape: f32[1,128], index: 6, kind: input, shape index: {}]   ;;  %s591_s7 = inlined_call_operand.hbm [shape: f32[2,128], index: 7, kind: output, shape index: {}]  }
   0x1   :  { %13 = vsyncpa [#allocation5], 0  ;;  %s26_s26 = sshll.u32 %s588_s4, 4  ;;  %s468_s27 = smov [#allocation3]   ;;  %s27_s26 = int_to_ptr.hbm [resolvable:$true] %s26_s26 }
   0x2   :  { %s28_s28 = sshll.u32 %s468_s27, 4  ;;  %s469_s29 = smov 128   ;;  %s29_s28 = int_to_ptr.vmem [resolvable:$true] %s28_s28 }
   0x3   :  { %s470_s30 = smov 8  }
   0x4   :  { %34 = dma.hbm_to_vmem [thread:$0]  %s27_s26, 4096, %s29_s28, [#allocation4], %s469_s29, %s469_s29, %s470_s30  }
   0x5   :  { %464 = dma.done.wait [#allocation4], 4096  }
   0x6   :  { %465 = vsyncadd [#allocation4], 4294963200  ;;  %vm62_vm0 = vcmask 1043456   ;;  %v48_v0 = vld [vmem:[%s585_s1 + $0x8] sm:$0xf]  ;;  %v47_v1 = vld [vmem:[%s585_s1] sm:$0xff] }
   0x7   :  { %370 = vmatpush.msk.msra.mxu0 %vm62_vm0, %v48_v0  ;;  %v43_v2 = vld [vmem:[%s584_s0] sm:$0xff]  ;;  %vm49_vm1 = vcmask 97280   ;;  %v44_v3 = vld [vmem:[%s584_s0 + $0x8] sm:$0xff]  ;;  %v45_v4 = vld [vmem:[%s584_s0 + $0x10] sm:$0xff]  ;;  %s360_s25 = sshll.u32 %s591_s7, 4  ;;  %vm349_vm9 = vcmask 1041409   ;;  %s361_s25 = int_to_ptr.hbm [resolvable:$true] %s360_s25 }
   0x8   :  { %v46_v5 = vld [vmem:[%s584_s0 + $0x18] sm:$0xff]  ;;  %v179_v8 = vld [vmem:[#allocation3 + $0x78] sm:$0xff]  ;;  %v177_v11 = vld [vmem:[#allocation3 + $0x68] sm:$0xff] }
   0x9   :  { %81 = vmatpush.msra.mxu0 %v47_v1  ;;  %196 = vmatpush.msra.mxu1 %v179_v8  ;;  %v178_v9 = vld [vmem:[#allocation3 + $0x70] sm:$0xff]  ;;  %v176_v13 = vld [vmem:[#allocation3 + $0x60] sm:$0xff]  ;;  %v175_v17 = vld [vmem:[#allocation3 + $0x58] sm:$0xff] }
   0xa   :  { %371 = vmatmul.msk.f32.vlgmr.msra.gmra.mxu0 %vm49_vm1, %v43_v2  ;;  %375 = vmatpush.msra.mxu3 %v179_v8  ;;  %v195_v18 = vld [vmem:[#allocation3 + $0xf8] sm:$0xff]  ;;  %v174_v21 = vld [vmem:[#allocation3 + $0x50] sm:$0xff]  ;;  %v173_v27 = vld [vmem:[#allocation3 + $0x48] sm:$0xff] }
   0xb   :  { %197 = vmatpush.msra.mxu1 %v178_v9  ;;  %225 = vmatpush.msrb.mxu0 %v195_v18  ;;  %v194_v22 = vld [vmem:[#allocation3 + $0xf0] sm:$0xff]  ;;  %v193_v28 = vld [vmem:[#allocation3 + $0xe8] sm:$0xff]  ;;  %v172_v31 = vld [vmem:[#allocation3 + $0x40] sm:$0xff] }
   0xc   :  { %376 = vmatpush.msra.mxu3 %v178_v9  ;;  %391 = vmatpush.msra.mxu2 %v195_v18  ;;  %v192_v32 = vld [vmem:[#allocation3 + $0xe0] sm:$0xff]  ;;  %v171_v35 = vld [vmem:[#allocation3 + $0x38] sm:$0xff]  ;;  %v170_v39 = vld [vmem:[#allocation3 + $0x30] sm:$0xff] }
   0xd   :  { %198 = vmatpush.msra.mxu1 %v177_v11  ;;  %226 = vmatpush.msrb.mxu0 %v194_v22  ;;  %v191_v36 = vld [vmem:[#allocation3 + $0xd8] sm:$0xff]  ;;  %v190_v40 = vld [vmem:[#allocation3 + $0xd0] sm:$0xff]  ;;  %v169_v43 = vld [vmem:[#allocation3 + $0x28] sm:$0xff] }
   0xe   :  { %377 = vmatpush.msra.mxu3 %v177_v11  ;;  %392 = vmatpush.msra.mxu2 %v194_v22  ;;  %v189_v44 = vld [vmem:[#allocation3 + $0xc8] sm:$0xff]  ;;  %v168_v47 = vld [vmem:[#allocation3 + $0x20] sm:$0xff]  ;;  %v167_v51 = vld [vmem:[#allocation3 + $0x18] sm:$0xff] }
   0xf   :  { %199 = vmatpush.msra.mxu1 %v176_v13  ;;  %227 = vmatpush.msrb.mxu0 %v193_v28  ;;  %v188_v48 = vld [vmem:[#allocation3 + $0xc0] sm:$0xff]  ;;  %v187_v52 = vld [vmem:[#allocation3 + $0xb8] sm:$0xff]  ;;  %v166_v53 = vld [vmem:[#allocation3 + $0x10] sm:$0xff] }
  0x10   :  { %378 = vmatpush.msra.mxu3 %v176_v13  ;;  %393 = vmatpush.msra.mxu2 %v193_v28  ;;  %v186_v54 = vld [vmem:[#allocation3 + $0xb0] sm:$0xff]  ;;  %v165_v57 = vld [vmem:[#allocation3 + $0x8] sm:$0xff]  ;;  %v164_v61 = vld [vmem:[#allocation3] sm:$0xff] }
  0x11   :  { %200 = vmatpush.msra.mxu1 %v175_v17  ;;  %228 = vmatpush.msrb.mxu0 %v192_v32  ;;  %v185_v58 = vld [vmem:[#allocation3 + $0xa8] sm:$0xff]  ;;  %v184_v62 = vld [vmem:[#allocation3 + $0xa0] sm:$0xff]  ;;  %v183_v1 = vld [vmem:[#allocation3 + $0x98] sm:$0xff] }
  0x12   :  { %372 = vmatmul.msk.f32.gmra.mxu0 %vm49_vm1, %v44_v3  ;;  %379 = vmatpush.msra.mxu3 %v175_v17  ;;  %v182_v2 = vld [vmem:[#allocation3 + $0x90] sm:$0xff]  ;;  %v181_v3 = vld [vmem:[#allocation3 + $0x88] sm:$0xff]  ;;  %v134_v18 = vld [vmem:[%s587_s3] sm:$0x1] }
  0x13   :  { %201 = vmatpush.msra.mxu1 %v174_v21  ;;  %394 = vmatpush.msra.mxu2 %v192_v32 }
  0x14   :  { %380 = vmatpush.msra.mxu3 %v174_v21  ;;  %229 = vmatpush.msrb.mxu0 %v191_v36 }
  0x15   :  { %202 = vmatpush.msra.mxu1 %v173_v27  ;;  %395 = vmatpush.msra.mxu2 %v191_v36 }
  0x16   :  { %381 = vmatpush.msra.mxu3 %v173_v27  ;;  %230 = vmatpush.msrb.mxu0 %v190_v40 }
  0x17   :  { %203 = vmatpush.msra.mxu1 %v172_v31  ;;  %396 = vmatpush.msra.mxu2 %v190_v40 }
  0x18   :  { %382 = vmatpush.msra.mxu3 %v172_v31  ;;  %231 = vmatpush.msrb.mxu0 %v189_v44 }
  0x19   :  { %204 = vmatpush.msra.mxu1 %v171_v35  ;;  %397 = vmatpush.msra.mxu2 %v189_v44 }
  0x1a   :  { %373 = vmatmul.msk.f32.gmra.mxu0 %vm49_vm1, %v45_v4  ;;  %383 = vmatpush.msra.mxu3 %v171_v35  ;;  %v471_v4 = vmov 0.0  }
  0x1b   :  { %205 = vmatpush.msra.mxu1 %v170_v39  ;;  %232 = vmatpush.msrb.mxu0 %v188_v48  ;;  %155 = vst [vmem:[#allocation2 + $0x20] sm:$0xff] %v471_v4 }
  0x1c   :  { %384 = vmatpush.msra.mxu3 %v170_v39  ;;  %398 = vmatpush.msra.mxu2 %v188_v48 }
  0x1d   :  { %206 = vmatpush.msra.mxu1 %v169_v43  ;;  %233 = vmatpush.msrb.mxu0 %v187_v52 }
  0x1e   :  { %385 = vmatpush.msra.mxu3 %v169_v43  ;;  %399 = vmatpush.msra.mxu2 %v187_v52 }
  0x1f   :  { %207 = vmatpush.msra.mxu1 %v168_v47  ;;  %234 = vmatpush.msrb.mxu0 %v186_v54 }
  0x20   :  { %386 = vmatpush.msra.mxu3 %v168_v47  ;;  %400 = vmatpush.msra.mxu2 %v186_v54 }
  0x21   :  { %208 = vmatpush.msra.mxu1 %v167_v51  ;;  %235 = vmatpush.msrb.mxu0 %v185_v58 }
  0x22   :  { %374 = vmatmul.msk.f32.gmra.mxu0 %vm49_vm1, %v46_v5  ;;  %387 = vmatpush.msra.mxu3 %v167_v51  ;;  %v180_v5 = vld [vmem:[#allocation3 + $0x80] sm:$0xff] }
  0x23   :  { %209 = vmatpush.msra.mxu1 %v166_v53  ;;  %401 = vmatpush.msra.mxu2 %v185_v58 }
  0x24   :  { %388 = vmatpush.msra.mxu3 %v166_v53  ;;  %236 = vmatpush.msrb.mxu0 %v184_v62 }
  0x25   :  { %210 = vmatpush.msra.mxu1 %v165_v57  ;;  %402 = vmatpush.msra.mxu2 %v184_v62 }
  0x26   :  { %389 = vmatpush.msra.mxu3 %v165_v57  ;;  %237 = vmatpush.msrb.mxu0 %v183_v1 }
  0x27   :  { %211 = vmatpush.msra.mxu1 %v164_v61  ;;  %403 = vmatpush.msra.mxu2 %v183_v1 }
  0x28   :  { %390 = vmatpush.msra.mxu3 %v164_v61  ;;  %238 = vmatpush.msrb.mxu0 %v182_v2 }
  0x29   :  { %404 = vmatpush.msra.mxu2 %v182_v2 }
  0x2a   :  { %239 = vmatpush.msrb.mxu0 %v181_v3 }
  0x2b   :  { %405 = vmatpush.msra.mxu2 %v181_v3 }
  0x2c   :  { %240 = vmatpush.msrb.mxu0 %v180_v5 }
  0x2d   :  { %406 = vmatpush.msra.mxu2 %v180_v5 }
  0x87   :  { %v534_v6 = vpop.f32.mrf.mxu0 }
  0x88   :  { %v104_v14 = vmul.f32 %v534_v6, %v534_v6 }
  0x8f   :  { %v536_v7 = vpop.f32.mrf.mxu0 }
  0x90   :  { %v105_v12 = vmul.f32 %v536_v7, %v536_v7  ;;  %v95_v15 = vadd.f32 %v536_v7, %v534_v6 }
  0x92   :  { %v108_v19 = vadd.f32 %v105_v12, %v104_v14  ;;  %v121_v14 = vld [vmem:[%s586_s2] sm:$0x1] }
  0x97   :  { %v538_v10 = vpop.f32.mrf.mxu0 }
  0x98   :  { %v106_v16 = vmul.f32 %v538_v10, %v538_v10  ;;  %v96_v20 = vadd.f32 %v95_v15, %v538_v10 }
  0x9a   :  { %v109_v24 = vadd.f32 %v108_v19, %v106_v16 }
  0x9f   :  { %v549_v23 = vpop.f32.mrf.mxu0 }
  0xa0   :  { %v97_v25 = vadd.f32 %v96_v20, %v549_v23  ;;  %v107_v26 = vmul.f32 %v549_v23, %v549_v23 }
  0xa2   :  { %v98_v29 = vrot.slane %v97_v25, 4  ;;  %v110_v30 = vadd.f32 %v109_v24, %v107_v26 }
  0xa4   :  { %v99_v33 = vadd.f32 %v98_v29, %v97_v25  ;;  %v111_v34 = vrot.slane %v110_v30, 4 }
  0xa6   :  { %v100_v37 = vrot.slane %v99_v33, 2  ;;  %v112_v38 = vadd.f32 %v111_v34, %v110_v30 }
  0xa8   :  { %v101_v41 = vadd.f32 %v100_v37, %v99_v33  ;;  %v113_v42 = vrot.slane %v112_v38, 2  ;;  %v254_v37 = vlaneseq }
  0xaa   :  { %v102_v45 = vrot.slane %v101_v41, 1  ;;  %v114_v46 = vadd.f32 %v113_v42, %v112_v38  ;;  %v255_v39 = vshrl.u32 %v254_v37, 7 }
  0xac   :  { %v103_v49 = vadd.f32 %v102_v45, %v101_v41  ;;  %v115_v50 = vrot.slane %v114_v46, 1  ;;  %v564_v40 = vadd.s32 8, %v255_v39 }
  0xae   :  { %v116_v55 = vadd.f32 %v115_v50, %v114_v46  ;;  %v117_v56 = vmul.f32 0.03125, %v103_v49  ;;  %vm258_vm5 = vcmp.ne.s32.totalorder %v564_v40, 15 }
  0xb0   :  { %v118_v59 = vmul.f32 0.03125, %v116_v55  ;;  %v119_v60 = vmul.f32 %v117_v56, %v117_v56 }
  0xb2   :  { %v120_v63 = vsub.f32 %v118_v59, %v119_v60 }
  0xb4   :  { %v122_v0 = vadd.f32 1e-05, %v120_v63 }
  0xb6   :  { %412 = vrsqrt.f32 %v122_v0  ;;  %vm129_vm3 = vweird.f32 %v122_v0 }
  0xbc   :  { %v413_v8 = vpop.eup %412 }
  0xbd   :  { %v124_v9 = vmul.f32 %v413_v8, %v122_v0  ;;  %vm130_vm2 = vweird.f32 %v413_v8 }
  0xbe   :  { %vm131_vm4 = vmor %vm129_vm3, %vm130_vm2 }
  0xbf   :  { %v125_v11 = vmul.f32 %v413_v8, %v124_v9 }
  0xc1   :  { %v126_v12 = vmul.f32 0.5, %v125_v11 }
  0xc3   :  { %v127_v13 = vsub.f32 1.5, %v126_v12 }
  0xc5   :  { %v128_v15 = vmul.f32 %v413_v8, %v127_v13 }
  0xc7   :  { %v132_v16 = vsel %vm131_vm4, %v413_v8, %v128_v15 }
  0xc8   :  { %v133_v17 = vmul.f32 %v132_v16, %v121_v14 }
  0xca   :  { %v135_v19 = vmul.f32 %v133_v17, %v117_v56  ;;  %v138_v20 = vperm.slane %v133_v17, 0 }
  0xcc   :  { %v136_v21 = vsub.f32 %v134_v18, %v135_v19  ;;  %v143_v22 = vmul.f32 %v138_v20, %v549_v23  ;;  %v140_v24 = vmul.f32 %v138_v20, %v534_v6  ;;  %v141_v26 = vmul.f32 %v138_v20, %v536_v7 }
  0xcd   :  { %v142_v27 = vmul.f32 %v138_v20, %v538_v10 }
  0xce   :  { %v145_v25 = vperm.slane %v136_v21, 0 }
  0xd0   :  { %v147_v28 = vadd.f32 %v145_v25, %v140_v24  ;;  %v148_v29 = vadd.f32 %v145_v25, %v141_v26  ;;  %v149_v30 = vadd.f32 %v145_v25, %v142_v27  ;;  %v150_v31 = vadd.f32 %v145_v25, %v143_v22  ;;  %v293_v25 = vld [vmem:[%s589_s5] sm:$0x1]  ;;  %s472_s5 = smov [#allocation6]  }
  0xd2   :  { %v151_v32 = vmax.f32 %v147_v28, 0.0  ;;  %v152_v33 = vmax.f32 %v148_v29, 0.0  ;;  %v153_v34 = vmax.f32 %v149_v30, 0.0  ;;  %v154_v35 = vmax.f32 %v150_v31, 0.0  ;;  %v306_v29 = vld [vmem:[%s590_s6] sm:$0x1] }
  0xd3   :  { %s358_s6 = sshll.u32 %s472_s5, 4  ;;  %s359_s6 = int_to_ptr.vmem [resolvable:$true] %s358_s6 }
  0xd4   :  { %156 = vst [vmem:[#allocation2] sm:$0xff] %v151_v32  ;;  %212 = vmatmul.f32.vlgmr.msra.gmra.mxu1 %v151_v32  ;;  %215 = vmatmul.f32.vlgmr.msra.gmra.mxu3 %v152_v33 }
  0xd5   :  { %157 = vst [vmem:[#allocation2 + $0x8] sm:$0xff] %v152_v33 }
  0xd6   :  { %158 = vst [vmem:[#allocation2 + $0x10] sm:$0xff] %v153_v34 }
  0xd7   :  { %159 = vst [vmem:[#allocation2 + $0x18] sm:$0xff] %v154_v35 }
  0xdc   :  { %218 = vmatmul.f32.gmra.mxu3 %v153_v34  ;;  %v160_v6 = vld [vmem:[#allocation2 + $0x1] sm:$0xff] }
  0xdd   :  { %241 = vmatmul.f32.vlgmr.msrb.gmra.mxu0 %v160_v6  ;;  %v161_v7 = vld [vmem:[#allocation2 + $0x9] sm:$0xff] }
  0xde   :  { %244 = vmatmul.f32.vlgmr.msra.gmra.mxu2 %v161_v7  ;;  %v162_v10 = vld [vmem:[#allocation2 + $0x11] sm:$0xff]  ;;  %v163_v23 = vld [vmem:[#allocation2 + $0x19] sm:$0xff] }
  0xe4   :  { %221 = vmatmul.f32.gmra.mxu3 %v154_v35 }
  0xe6   :  { %247 = vmatmul.f32.gmra.mxu2 %v162_v10 }
  0xee   :  { %250 = vmatmul.f32.gmra.mxu2 %v163_v23 }
 0x151   :  { %v213_v45 = vpop.f32.mrf.mxu1 }
 0x157   :  { %v216_v36 = vpop.f32.mrf.mxu3 }
 0x15a   :  { %v242_v44 = vpop.f32.mrf.mxu0 }
 0x15b   :  { %v243_v47 = vadd.f32 %v242_v44, %v213_v45 }
 0x15d   :  { %v276_v50 = vmul.f32 %v243_v47, %v243_v47 }
 0x15f   :  { %v219_v41 = vpop.f32.mrf.mxu3 }
 0x161   :  { %v245_v38 = vpop.f32.mrf.mxu2 }
 0x162   :  { %v246_v42 = vadd.f32 %v245_v38, %v216_v36 }
 0x164   :  { %v264_v46 = vsel %vm258_vm5, %v246_v42, 0.0 }
 0x165   :  { %v277_v49 = vmul.f32 %v264_v46, %v264_v46  ;;  %v267_v51 = vadd.f32 %v264_v46, %v243_v47 }
 0x167   :  { %v222_v52 = vpop.f32.mrf.mxu3  ;;  %v280_v56 = vadd.f32 %v277_v49, %v276_v50 }
 0x169   :  { %v248_v43 = vpop.f32.mrf.mxu2 }
 0x16a   :  { %v249_v48 = vadd.f32 %v248_v43, %v219_v41 }
 0x16c   :  { %v278_v53 = vmul.f32 %v249_v48, %v249_v48  ;;  %v268_v57 = vadd.f32 %v267_v51, %v249_v48 }
 0x16e   :  { %v281_v59 = vadd.f32 %v280_v56, %v278_v53 }
 0x171   :  { %v251_v54 = vpop.f32.mrf.mxu2 }
 0x172   :  { %v252_v55 = vadd.f32 %v251_v54, %v222_v52 }
 0x174   :  { %v266_v58 = vsel %vm258_vm5, %v252_v55, 0.0 }
 0x175   :  { %v269_v60 = vadd.f32 %v268_v57, %v266_v58  ;;  %v279_v61 = vmul.f32 %v266_v58, %v266_v58 }
 0x177   :  { %v270_v62 = vrot.slane %v269_v60, 4  ;;  %v282_v63 = vadd.f32 %v281_v59, %v279_v61 }
 0x179   :  { %v271_v0 = vadd.f32 %v270_v62, %v269_v60  ;;  %v283_v1 = vrot.slane %v282_v63, 4 }
 0x17b   :  { %v272_v2 = vrot.slane %v271_v0, 2  ;;  %v284_v3 = vadd.f32 %v283_v1, %v282_v63 }
 0x17d   :  { %v273_v4 = vadd.f32 %v272_v2, %v271_v0  ;;  %v285_v5 = vrot.slane %v284_v3, 2 }
 0x17f   :  { %v274_v8 = vrot.slane %v273_v4, 1  ;;  %v286_v9 = vadd.f32 %v285_v5, %v284_v3 }
 0x181   :  { %v275_v11 = vadd.f32 %v274_v8, %v273_v4  ;;  %v287_v12 = vrot.slane %v286_v9, 1 }
 0x183   :  { %v288_v13 = vadd.f32 %v287_v12, %v286_v9  ;;  %v289_v14 = vmul.f32 0.033333335, %v275_v11 }
 0x185   :  { %v290_v15 = vmul.f32 0.033333335, %v288_v13  ;;  %v291_v16 = vmul.f32 %v289_v14, %v289_v14 }
 0x187   :  { %v292_v17 = vsub.f32 %v290_v15, %v291_v16 }
 0x189   :  { %v294_v18 = vadd.f32 1e-05, %v292_v17 }
 0x18b   :  { %414 = vrsqrt.f32 %v294_v18  ;;  %vm301_vm7 = vweird.f32 %v294_v18 }
 0x191   :  { %v415_v19 = vpop.eup %414 }
 0x192   :  { %v296_v20 = vmul.f32 %v415_v19, %v294_v18  ;;  %vm302_vm6 = vweird.f32 %v415_v19 }
 0x193   :  { %vm303_vm8 = vmor %vm301_vm7, %vm302_vm6 }
 0x194   :  { %v297_v21 = vmul.f32 %v415_v19, %v296_v20 }
 0x196   :  { %v298_v22 = vmul.f32 0.5, %v297_v21 }
 0x198   :  { %v299_v24 = vsub.f32 1.5, %v298_v22 }
 0x19a   :  { %v300_v26 = vmul.f32 %v415_v19, %v299_v24 }
 0x19c   :  { %v304_v27 = vsel %vm303_vm8, %v415_v19, %v300_v26 }
 0x19d   :  { %v305_v28 = vmul.f32 %v304_v27, %v293_v25 }
 0x19f   :  { %v307_v30 = vmul.f32 %v305_v28, %v289_v14  ;;  %v310_v31 = vperm.slane %v305_v28, 0 }
 0x1a1   :  { %v308_v32 = vsub.f32 %v306_v29, %v307_v30  ;;  %v312_v33 = vmul.f32 %v310_v31, %v243_v47  ;;  %v313_v34 = vmul.f32 %v310_v31, %v246_v42  ;;  %v314_v35 = vmul.f32 %v310_v31, %v249_v48 }
 0x1a2   :  { %v315_v6 = vmul.f32 %v310_v31, %v252_v55 }
 0x1a3   :  { %v317_v7 = vperm.slane %v308_v32, 0 }
 0x1a5   :  { %v321_v10 = vadd.f32 %v317_v7, %v314_v35  ;;  %v322_v23 = vadd.f32 %v317_v7, %v315_v6  ;;  %v319_v36 = vadd.f32 %v317_v7, %v312_v33  ;;  %v320_v37 = vadd.f32 %v317_v7, %v313_v34 }
 0x1a7   :  { %v325_v38 = vmax.f32 %v321_v10, 0.0  ;;  %v326_v39 = vmax.f32 %v322_v23, 0.0  ;;  %v323_v41 = vmax.f32 %v319_v36, 0.0  ;;  %v324_v43 = vmax.f32 %v320_v37, 0.0 }
 0x1a9   :  { %v330_v44 = vsel %vm258_vm5, %v326_v39, 0.0  ;;  %v328_v45 = vsel %vm258_vm5, %v324_v43, 0.0 }
 0x1aa   :  { %v338_v46 = vadd.f32 %v330_v44, %v325_v38  ;;  %v331_v47 = vadd.f32 %v328_v45, %v323_v41 }
 0x1ac   :  { %v339_v42 = vrot.slane %v338_v46, 4  ;;  %v332_v48 = vrot.slane %v331_v47, 4 }
 0x1ae   :  { %v340_v49 = vadd.f32 %v339_v42, %v338_v46  ;;  %v333_v50 = vadd.f32 %v332_v48, %v331_v47 }
 0x1b0   :  { %v341_v51 = vrot.slane %v340_v49, 2  ;;  %v334_v52 = vrot.slane %v333_v50, 2 }
 0x1b2   :  { %v335_v53 = vadd.f32 %v334_v52, %v333_v50  ;;  %v342_v54 = vadd.f32 %v341_v51, %v340_v49 }
 0x1b4   :  { %v336_v55 = vrot.slane %v335_v53, 1  ;;  %v343_v56 = vrot.slane %v342_v54, 1 }
 0x1b6   :  { %v337_v57 = vadd.f32 %v336_v55, %v335_v53  ;;  %v344_v58 = vadd.f32 %v343_v56, %v342_v54 }
 0x1b8   :  { %v345_v40 = vmul.f32 0.06666667, %v337_v57  ;;  %v346_v59 = vmul.f32 0.06666667, %v344_v58 }
 0x1ba   :  { %v350_v60 = vsel %vm349_vm9, %v346_v59, %v345_v40 }
 0x1bb   :  { %352 = vst [vmem:[#allocation6] sm:$0x3] %v350_v60 }
 0x1bc   :  { %363 = dma.vmem_to_hbm [thread:$0]  %s359_s6, 32, %s361_s25, [#allocation5]  }
 0x1bd   :  { %466 = dma.done.wait [#allocation5], 32  }
 0x1be   :  { %467 = vsyncadd [#allocation5], 4294967264 }
 0x1bf   :  { %368 = vsyncpa [#allocation4], 1 }
 0x1c0   :  { %369 = vsyncpa [#allocation5], 1 }

</bundles_post_ra>
